<compile_context>
chip_gen: v5e
topology: v5e:2x2
jax: 0.10.0
libtpu: 0.0.40
codegen_flags: <defaults>
</compile_context>

<pallas_src>
import math
import numpy as np
import jax
import jax.numpy as jnp
from jax import lax
from jax.experimental import pallas as pl
from jax.experimental.pallas import tpu as pltpu


def _round_up(v, m):
    return ((v + m - 1) // m) * m


def _vmem_limit_bytes(n_pad, f_pad, h_pad, c_pad, adj_bytes):
    """Scoped-VMEM limit derived from the resident working set (chip-aware cap)."""
    f32 = 4
    adj = n_pad * n_pad * adj_bytes                       # single resident N^2 buffer
    scratch = 2 * n_pad * h_pad * f32                     # h, h0 scratch
    x_in = 2 * n_pad * f_pad * f32                        # conservative: double-buffered
    weights = 2 * f32 * (f_pad * h_pad + 2 * h_pad * h_pad
                         + f_pad * c_pad + h_pad * c_pad + 3 * max(h_pad, c_pad))
    seg = 2 * 2 * n_pad * 4
    out = 2 * n_pad * max(h_pad, c_pad) * f32
    need = adj + scratch + x_in + weights + seg + out + 4 * 1024 * 1024  # margin
    try:
        kind = jax.devices()[0].device_kind.lower()
    except Exception:
        kind = ""
    # v7x has 64 MiB physical VMEM -> cap lower; v5e/v6e have 128 MiB.
    cap = (56 if ("v7" in kind or kind == "") else 100) * 1024 * 1024
    return int(min(max(need, 32 * 1024 * 1024), cap))


# ------------------------------ fused kernel -------------------------------- #

# Abramowitz & Stegun 4.4.46 minimax polynomial for acos, |err| <= ~2e-8 rad.
_ACOS_COEFFS = (-0.0012624911, 0.0066700901, -0.0170881256, 0.0308918810,
                -0.0501743046, 0.0889789874, -0.2145988016, 1.5707963050)


def _acos(c):
    """acos(c) for c in [-1, 1]; VPU mul/add/select + sqrt only (Mosaic-safe)."""
    a = jnp.abs(c)
    p = jnp.float32(_ACOS_COEFFS[0])
    for coef in _ACOS_COEFFS[1:]:
        p = p * a + jnp.float32(coef)
    r = jnp.sqrt(jnp.maximum(1.0 - a, 0.0)) * p
    return jnp.where(c >= 0.0, r, jnp.float32(math.pi) - r)


def _make_fused_kernel(*, alpha, nclass, nlayers, use_residue, return_feature,
                       adj_dtype):
    inv_pi = 1.0 / math.pi

    def kernel(segc_ref, segr_ref, x_ref, w0_ref, b0_ref, wc_ref,
               w1x_ref, w1h_ref, b1_ref, out_ref, adj_sc, h_sc, h0_sc):
        l = pl.program_id(0)

        @pl.when(l == 0)
        def _init():
            x = x_ref[...]
            # --- cosine similarity Gram matrix (f32 MXU; xn @ xn^T, no relayout) ---
            ssq = jnp.sum(x * x, axis=1, keepdims=True)
            xn = x * lax.rsqrt(jnp.maximum(ssq, 1e-12))      # eps guards zero rows
            cos = lax.dot_general(xn, xn, (((1,), (1,)), ((), ())),
                                  preferred_element_type=jnp.float32)
            cos = jnp.clip(cos, -1.0, 1.0) * 0.99999
            # --- arccos fused in-kernel: zero N^2 HBM traffic, no extra launch ---
            ac = _acos(cos)
            # --- block-diagonal dialogue mask from segment ids (pad rows = -1) ---
            segc = segc_ref[...]                              # (N, 1) int32
            segr = segr_ref[...]                              # (1, N) int32
            mask = jnp.logical_and(segc == segr, segc >= 0).astype(jnp.float32)
            sim = mask * (1.0 - ac * inv_pi)
            # --- symmetric normalization D^-1/2 A D^-1/2 ---
            d_row = jnp.sum(sim, axis=1, keepdims=True)
            d_col = jnp.sum(sim, axis=0, keepdims=True)       # == d_row^T (symmetric)
            dinv_r = jnp.where(d_row > 0.0, lax.rsqrt(d_row), 0.0)
            dinv_c = jnp.where(d_col > 0.0, lax.rsqrt(d_col), 0.0)
            adj_sc[...] = (dinv_r * sim * dinv_c).astype(adj_dtype)

            # --- fc0 + ReLU (dropout is identity in eval mode) ---
            h0 = jnp.dot(x, w0_ref[...],
                         preferred_element_type=jnp.float32) + b0_ref[...]
            h0 = jnp.maximum(h0, 0.0)
            h0_sc[...] = h0
            h_sc[...] = h0

            # Output is only computed at the last grid step; zero it here so any
            # intermediate writeback of the constant-index output block is defined.
            out_ref[...] = jnp.zeros_like(out_ref)

        # ---- GraphConvolution layer l (theta folded host-side into wc) ---- #
        # adj is stored in bf16; propagate on the bf16 MXU path with f32 accumulation.
        hi = jnp.dot(adj_sc[...], h_sc[...].astype(adj_dtype),
                     preferred_element_type=jnp.float32)
        support = (1.0 - alpha) * hi + alpha * h0_sc[...]
        h_sc[...] = jnp.maximum(
            jnp.dot(support, wc_ref[...], preferred_element_type=jnp.float32), 0.0)

        @pl.when(l == nlayers - 1)
        def _final():
            h = h_sc[...]
            if return_feature:
                out_ref[...] = h
            else:
                z = jnp.dot(h, w1h_ref[...],
                            preferred_element_type=jnp.float32) + b1_ref[...]
                if use_residue:   # concat([x, h]) @ w1  ==  x @ w1_x + h @ w1_h
                    z = z + jnp.dot(x_ref[...], w1x_ref[...],
                                    preferred_element_type=jnp.float32)
                # mask padded class lanes, then numerically-stable log_softmax
                col = lax.broadcasted_iota(jnp.int32, z.shape, 1)
                z = jnp.where(col < nclass, z, -1e30)
                m = jnp.max(z, axis=1, keepdims=True)
                lse = jnp.log(jnp.sum(jnp.exp(z - m), axis=1, keepdims=True)) + m
                out_ref[...] = z - lse

    return kernel


# -------------------------------- GCNII model ------------------------------- #

class GCNII:
    def __init__(self, key, nfeat, nlayers, nhidden, nclass, dropout, lamda, alpha,
                 variant=False, return_feature=False, use_residue=True,
                 adj_dtype=jnp.bfloat16):
        # TODO(synk): variant=True GraphConvolution and new_graph speaker-based
        # adjacency construction are not implemented.
        assert not variant, "only variant=False is implemented"
        assert nlayers >= 1
        self.nfeat, self.nhidden, self.nclass = nfeat, nhidden, nclass
        self.nlayers = nlayers
        self.dropout = dropout            # TODO(synk): dropout = identity (eval mode)
        self.lamda, self.alpha = lamda, alpha
        self.return_feature = return_feature
        self.use_residue = use_residue
        self.adj_dtype = adj_dtype

        # lane-padded sizes (128-wide vreg lanes)
        self.F_pad = _round_up(nfeat, 128)
        self.H_pad = _round_up(nhidden, 128)
        self.C_pad = _round_up(nclass, 128)

        keys = jax.random.split(key, nlayers + 4)
        # fcs[0] = nn.Linear(nfeat, nhidden): U(-1/sqrt(in), 1/sqrt(in))
        b0 = 1.0 / math.sqrt(nfeat)
        self.w0 = jax.random.uniform(keys[0], (nfeat, nhidden), jnp.float32, -b0, b0)
        self.b0 = jax.random.uniform(keys[1], (1, nhidden), jnp.float32, -b0, b0)
        # GraphConvolution weights: U(-1/sqrt(out), 1/sqrt(out))
        stdv = 1.0 / math.sqrt(nhidden)
        self.conv_ws = [
            jax.random.uniform(keys[2 + i], (nhidden, nhidden), jnp.float32, -stdv, stdv)
            for i in range(nlayers)
        ]
        if not return_feature:
            in2 = nfeat + nhidden
            b1 = 1.0 / math.sqrt(in2)
            self.w1 = jax.random.uniform(keys[2 + nlayers], (in2, nclass), jnp.float32, -b1, b1)
            self.b1 = jax.random.uniform(keys[3 + nlayers], (1, nclass), jnp.float32, -b1, b1)

        # ---- padded / theta-folded parameters used by the fused kernel ---- #
        self.w0_pad = (jnp.zeros((self.F_pad, self.H_pad), jnp.float32)
                       .at[:nfeat, :nhidden].set(self.w0))
        self.b0_pad = jnp.zeros((1, self.H_pad), jnp.float32).at[:, :nhidden].set(self.b0)

        eye = jnp.eye(nhidden, dtype=jnp.float32)
        folded = []
        for i, w in enumerate(self.conv_ws):
            theta = math.log(self.lamda / (i + 1) + 1.0)
            wf = theta * w + (1.0 - theta) * eye          # fold: out = support @ W'
            folded.append(jnp.zeros((self.H_pad, self.H_pad), jnp.float32)
                          .at[:nhidden, :nhidden].set(wf))
        self.wconv_pad = jnp.stack(folded)                # (nlayers, H_pad, H_pad)

        if not return_feature:
            w1x, w1h = self.w1[:nfeat], self.w1[nfeat:]
            self.w1x_pad = (jnp.zeros((self.F_pad, self.C_pad), jnp.float32)
                            .at[:nfeat, :nclass].set(w1x))
            self.w1h_pad = (jnp.zeros((self.H_pad, self.C_pad), jnp.float32)
                            .at[:nhidden, :nclass].set(w1h))
            self.b1_pad = jnp.zeros((1, self.C_pad), jnp.float32).at[:, :nclass].set(self.b1)
        else:
            self.w1x_pad = jnp.zeros((self.F_pad, self.C_pad), jnp.float32)
            self.w1h_pad = jnp.zeros((self.H_pad, self.C_pad), jnp.float32)
            self.b1_pad = jnp.zeros((1, self.C_pad), jnp.float32)

    def __call__(self, x, dia_len):
        n = x.shape[0]
        assert n == sum(dia_len)
        n_pad = max(_round_up(n, 8), 8)
        F_pad, H_pad, C_pad = self.F_pad, self.H_pad, self.C_pad

        x_pad = jnp.zeros((n_pad, F_pad), jnp.float32).at[:n, :self.nfeat].set(x)

        # Per-node dialogue id; padded rows get -1 so they connect to nothing.
        seg = np.full((n_pad,), -1, dtype=np.int32)
        start = 0
        for i, L in enumerate(dia_len):
            seg[start:start + L] = i
            start += L
        seg_col = jnp.asarray(seg.reshape(n_pad, 1))
        seg_row = jnp.asarray(seg.reshape(1, n_pad))

        kernel = _make_fused_kernel(alpha=self.alpha, nclass=self.nclass,
                                    nlayers=self.nlayers, use_residue=self.use_residue,
                                    return_feature=self.return_feature,
                                    adj_dtype=self.adj_dtype)

        def _inv(shape):
            zeros = (0,) * len(shape)
            return pl.BlockSpec(shape, lambda l, _z=zeros: _z)   # grid-invariant block

        in_specs = [
            _inv((n_pad, 1)),                                    # seg (column)
            _inv((1, n_pad)),                                    # seg (row)
            _inv((n_pad, F_pad)),                                # x
            _inv((F_pad, H_pad)),                                # w0
            _inv((1, H_pad)),                                    # b0
            # streamed per-layer conv weight; leading dim squeezed -> (H_pad, H_pad)
            pl.BlockSpec((None, H_pad, H_pad), lambda l: (l, 0, 0)),
            _inv((F_pad, C_pad)),                                # w1 (x part)
            _inv((H_pad, C_pad)),                                # w1 (h part)
            _inv((1, C_pad)),                                    # b1
        ]
        out_w = H_pad if self.return_feature else C_pad
        out_specs = _inv((n_pad, out_w))
        out_shape = jax.ShapeDtypeStruct((n_pad, out_w), jnp.float32)

        adj_bytes = jnp.dtype(self.adj_dtype).itemsize
        vmem_limit = _vmem_limit_bytes(n_pad, F_pad, H_pad, C_pad, adj_bytes)

        out_pad = pl.pallas_call(
            kernel,
            out_shape=out_shape,
            grid_spec=pltpu.PrefetchScalarGridSpec(
                num_scalar_prefetch=0,
                grid=(self.nlayers,),
                in_specs=in_specs,
                out_specs=out_specs,
                scratch_shapes=[
                    pltpu.VMEM((n_pad, n_pad), self.adj_dtype),   # adj (single N^2 resident)
                    pltpu.VMEM((n_pad, H_pad), jnp.float32),      # h
                    pltpu.VMEM((n_pad, H_pad), jnp.float32),      # h0
                ]),
            compiler_params=pltpu.CompilerParams(
                dimension_semantics=("arbitrary",),       # layers are sequential
                vmem_limit_bytes=vmem_limit),
        )(seg_col, seg_row, x_pad, self.w0_pad, self.b0_pad, self.wconv_pad,
          self.w1x_pad, self.w1h_pad, self.b1_pad)

        if self.return_feature:
            h = out_pad[:n, :self.nhidden]
            return jnp.concatenate([x, h], axis=-1) if self.use_residue else h
        return out_pad[:n, :self.nclass]


# ----------------------------------- main ----------------------------------- #

if __name__ == "__main__":
    key = jax.random.PRNGKey(0)
    kx, kp = jax.random.split(key)

    dia_len = [10, 6]                 # two dialogues, N = 16 utterance nodes
    n = sum(dia_len)
    nfeat, nlayers, nhidden, nclass = 32, 2, 64, 8

    x = jax.random.normal(kx, (n, nfeat), dtype=jnp.float32)

    model = GCNII(kp, nfeat=nfeat, nlayers=nlayers, nhidden=nhidden, nclass=nclass,
                  dropout=0.5, lamda=0.5, alpha=0.1,
                  variant=False, return_feature=False, use_residue=True)

    out = model(x, dia_len)
    out = jax.block_until_ready(out)
    assert out.shape == (n, nclass)
    assert bool(jnp.all(jnp.isfinite(out)))
    # log_softmax rows must sum to 1 in probability space
    assert bool(jnp.allclose(jnp.sum(jnp.exp(out), axis=1), 1.0, atol=1e-3))
    print("KERNEL_OK")
</pallas_src>

<mosaic_0001>
module attributes {stable_mosaic.version = 11 : i64} {
  func.func @kernel(%arg0: i32, %arg1: memref<16x1xi32, #tpu.memory_space<vmem>>, %arg2: memref<1x16xi32, #tpu.memory_space<vmem>>, %arg3: memref<16x128xf32, #tpu.memory_space<vmem>>, %arg4: memref<128x128xf32, #tpu.memory_space<vmem>>, %arg5: memref<1x128xf32, #tpu.memory_space<vmem>>, %arg6: memref<1x128x128xf32, #tpu.memory_space<vmem>>, %arg7: memref<128x128xf32, #tpu.memory_space<vmem>>, %arg8: memref<128x128xf32, #tpu.memory_space<vmem>>, %arg9: memref<1x128xf32, #tpu.memory_space<vmem>>, %arg10: memref<16x128xf32, #tpu.memory_space<vmem>>, %arg11: memref<16x16xbf16, #tpu.memory_space<vmem>>, %arg12: memref<16x128xf32, #tpu.memory_space<vmem>>, %arg13: memref<16x128xf32, #tpu.memory_space<vmem>>) attributes {dimension_semantics = [#tpu.dimension_semantics<arbitrary>], iteration_bounds = array<i64: 2>, scalar_prefetch = 0 : i64, scratch_operands = 3 : i64, tpu.core_type = #tpu.core_type<tc>, window_params = [{pipeline_mode = #tpu.pipeline_mode<synchronous>, transform_indices = @transform_0, window_bounds = array<i64: 16, 1>}, {pipeline_mode = #tpu.pipeline_mode<synchronous>, transform_indices = @transform_1, window_bounds = array<i64: 1, 16>}, {pipeline_mode = #tpu.pipeline_mode<synchronous>, transform_indices = @transform_2, window_bounds = array<i64: 16, 128>}, {pipeline_mode = #tpu.pipeline_mode<synchronous>, transform_indices = @transform_3, window_bounds = array<i64: 128, 128>}, {pipeline_mode = #tpu.pipeline_mode<synchronous>, transform_indices = @transform_4, window_bounds = array<i64: 1, 128>}, {transform_indices = @transform_5, window_bounds = array<i64: 1, 128, 128>}, {pipeline_mode = #tpu.pipeline_mode<synchronous>, transform_indices = @transform_6, window_bounds = array<i64: 128, 128>}, {pipeline_mode = #tpu.pipeline_mode<synchronous>, transform_indices = @transform_7, window_bounds = array<i64: 128, 128>}, {pipeline_mode = #tpu.pipeline_mode<synchronous>, transform_indices = @transform_8, window_bounds = array<i64: 1, 128>}, {pipeline_mode = #tpu.pipeline_mode<synchronous>, transform_indices = @transform_9, window_bounds = array<i64: 16, 128>}]} {
    %c0_i32 = arith.constant 0 : i32
    %0 = arith.cmpi eq, %arg0, %c0_i32 : i32
    %1 = arith.extui %0 : i1 to i32
    %c0_i32_0 = arith.constant 0 : i32
    %2 = arith.cmpi ne, %1, %c0_i32_0 : i32
    scf.if %2 {
      %c0_16 = arith.constant 0 : index
      %c0_17 = arith.constant 0 : index
      %22 = vector.load %arg3[%c0_16, %c0_17] : memref<16x128xf32, #tpu.memory_space<vmem>>, vector<16x128xf32>
      %23 = arith.mulf %22, %22 : vector<16x128xf32>
      %cst_18 = arith.constant dense<0.000000e+00> : vector<16xf32>
      %24 = vector.multi_reduction <add>, %23, %cst_18 [1] : vector<16x128xf32> to vector<16xf32>
      %25 = vector.shape_cast %24 : vector<16xf32> to vector<16x1xf32>
      %cst_19 = arith.constant 9.99999996E-13 : f32
      %26 = vector.broadcast %cst_19 : f32 to vector<16x1xf32>
      %27 = arith.maximumf %25, %26 : vector<16x1xf32>
      %28 = math.rsqrt %27 : vector<16x1xf32>
      %29 = vector.broadcast %28 : vector<16x1xf32> to vector<16x128xf32>
      %30 = arith.mulf %22, %29 : vector<16x128xf32>
      %cst_20 = arith.constant dense<0.000000e+00> : vector<16x16xf32>
      %31 = tpu.matmul %30, %30, %cst_20 {dimension_numbers = #tpu.dot_dimension_numbers<[1], [1], [0], [0], [0, 0, 1, 0], [], []>} : vector<16x128xf32>, vector<16x128xf32>, vector<16x16xf32> -> vector<16x16xf32>
      %cst_21 = arith.constant -1.000000e+00 : f32
      %cst_22 = arith.constant 1.000000e+00 : f32
      %32 = vector.broadcast %cst_21 : f32 to vector<16x16xf32>
      %33 = arith.maximumf %32, %31 : vector<16x16xf32>
      %34 = vector.broadcast %cst_22 : f32 to vector<16x16xf32>
      %35 = arith.minimumf %34, %33 : vector<16x16xf32>
      %cst_23 = arith.constant 0.999989986 : f32
      %36 = vector.broadcast %cst_23 : f32 to vector<16x16xf32>
      %37 = arith.mulf %35, %36 : vector<16x16xf32>
      %38 = math.absf %37 : vector<16x16xf32>
      %cst_24 = arith.constant -0.0012624911 : f32
      %39 = vector.broadcast %cst_24 : f32 to vector<16x16xf32>
      %40 = arith.mulf %39, %38 : vector<16x16xf32>
      %cst_25 = arith.constant 6.670090e-03 : f32
      %41 = vector.broadcast %cst_25 : f32 to vector<16x16xf32>
      %42 = arith.addf %40, %41 : vector<16x16xf32>
      %43 = arith.mulf %42, %38 : vector<16x16xf32>
      %cst_26 = arith.constant -0.0170881264 : f32
      %44 = vector.broadcast %cst_26 : f32 to vector<16x16xf32>
      %45 = arith.addf %43, %44 : vector<16x16xf32>
      %46 = arith.mulf %45, %38 : vector<16x16xf32>
      %cst_27 = arith.constant 0.0308918804 : f32
      %47 = vector.broadcast %cst_27 : f32 to vector<16x16xf32>
      %48 = arith.addf %46, %47 : vector<16x16xf32>
      %49 = arith.mulf %48, %38 : vector<16x16xf32>
      %cst_28 = arith.constant -0.0501743034 : f32
      %50 = vector.broadcast %cst_28 : f32 to vector<16x16xf32>
      %51 = arith.addf %49, %50 : vector<16x16xf32>
      %52 = arith.mulf %51, %38 : vector<16x16xf32>
      %cst_29 = arith.constant 0.0889789909 : f32
      %53 = vector.broadcast %cst_29 : f32 to vector<16x16xf32>
      %54 = arith.addf %52, %53 : vector<16x16xf32>
      %55 = arith.mulf %54, %38 : vector<16x16xf32>
      %cst_30 = arith.constant -0.214598805 : f32
      %56 = vector.broadcast %cst_30 : f32 to vector<16x16xf32>
      %57 = arith.addf %55, %56 : vector<16x16xf32>
      %58 = arith.mulf %57, %38 : vector<16x16xf32>
      %cst_31 = arith.constant 1.57079625 : f32
      %59 = vector.broadcast %cst_31 : f32 to vector<16x16xf32>
      %60 = arith.addf %58, %59 : vector<16x16xf32>
      %cst_32 = arith.constant 1.000000e+00 : f32
      %61 = vector.broadcast %cst_32 : f32 to vector<16x16xf32>
      %62 = arith.subf %61, %38 : vector<16x16xf32>
      %cst_33 = arith.constant 0.000000e+00 : f32
      %63 = vector.broadcast %cst_33 : f32 to vector<16x16xf32>
      %64 = arith.maximumf %62, %63 : vector<16x16xf32>
      %65 = math.sqrt %64 : vector<16x16xf32>
      %66 = arith.mulf %65, %60 : vector<16x16xf32>
      %cst_34 = arith.constant 0.000000e+00 : f32
      %67 = vector.broadcast %cst_34 : f32 to vector<16x16xf32>
      %68 = arith.cmpf oge, %37, %67 : vector<16x16xf32>
      %cst_35 = arith.constant 3.14159274 : f32
      %69 = vector.broadcast %cst_35 : f32 to vector<16x16xf32>
      %70 = arith.subf %69, %66 : vector<16x16xf32>
      %71 = arith.select %68, %66, %70 : vector<16x16xi1>, vector<16x16xf32>
      %c0_36 = arith.constant 0 : index
      %c0_37 = arith.constant 0 : index
      %72 = vector.load %arg1[%c0_36, %c0_37] : memref<16x1xi32, #tpu.memory_space<vmem>>, vector<16x1xi32>
      %c0_38 = arith.constant 0 : index
      %c0_39 = arith.constant 0 : index
      %73 = vector.load %arg2[%c0_38, %c0_39] : memref<1x16xi32, #tpu.memory_space<vmem>>, vector<1x16xi32>
      %74 = vector.broadcast %72 : vector<16x1xi32> to vector<16x16xi32>
      %75 = vector.broadcast %73 : vector<1x16xi32> to vector<16x16xi32>
      %76 = arith.cmpi eq, %74, %75 : vector<16x16xi32>
      %c0_i32_40 = arith.constant 0 : i32
      %77 = vector.broadcast %c0_i32_40 : i32 to vector<16x1xi32>
      %78 = arith.cmpi sge, %72, %77 : vector<16x1xi32>
      %79 = vector.broadcast %78 : vector<16x1xi1> to vector<16x16xi1>
      %80 = arith.andi %76, %79 : vector<16x16xi1>
      %81 = arith.extui %80 : vector<16x16xi1> to vector<16x16xi32>
      %82 = arith.sitofp %81 : vector<16x16xi32> to vector<16x16xf32>
      %cst_41 = arith.constant 0.318309873 : f32
      %83 = vector.broadcast %cst_41 : f32 to vector<16x16xf32>
      %84 = arith.mulf %71, %83 : vector<16x16xf32>
      %cst_42 = arith.constant 1.000000e+00 : f32
      %85 = vector.broadcast %cst_42 : f32 to vector<16x16xf32>
      %86 = arith.subf %85, %84 : vector<16x16xf32>
      %87 = arith.mulf %82, %86 : vector<16x16xf32>
      %cst_43 = arith.constant dense<0.000000e+00> : vector<16xf32>
      %88 = vector.multi_reduction <add>, %87, %cst_43 [1] : vector<16x16xf32> to vector<16xf32>
      %89 = vector.shape_cast %88 : vector<16xf32> to vector<16x1xf32>
      %cst_44 = arith.constant dense<0.000000e+00> : vector<16xf32>
      %90 = vector.multi_reduction <add>, %87, %cst_44 [0] : vector<16x16xf32> to vector<16xf32>
      %91 = vector.shape_cast %90 : vector<16xf32> to vector<1x16xf32>
      %cst_45 = arith.constant 0.000000e+00 : f32
      %92 = vector.broadcast %cst_45 : f32 to vector<16x1xf32>
      %93 = arith.cmpf ogt, %89, %92 : vector<16x1xf32>
      %94 = math.rsqrt %89 : vector<16x1xf32>
      %cst_46 = arith.constant 0.000000e+00 : f32
      %95 = vector.broadcast %cst_46 : f32 to vector<16x1xf32>
      %96 = arith.select %93, %94, %95 : vector<16x1xi1>, vector<16x1xf32>
      %cst_47 = arith.constant 0.000000e+00 : f32
      %97 = vector.broadcast %cst_47 : f32 to vector<1x16xf32>
      %98 = arith.cmpf ogt, %91, %97 : vector<1x16xf32>
      %99 = math.rsqrt %91 : vector<1x16xf32>
      %cst_48 = arith.constant 0.000000e+00 : f32
      %100 = vector.broadcast %cst_48 : f32 to vector<1x16xf32>
      %101 = arith.select %98, %99, %100 : vector<1x16xi1>, vector<1x16xf32>
      %102 = vector.broadcast %96 : vector<16x1xf32> to vector<16x16xf32>
      %103 = arith.mulf %102, %87 : vector<16x16xf32>
      %104 = vector.broadcast %101 : vector<1x16xf32> to vector<16x16xf32>
      %105 = arith.mulf %103, %104 : vector<16x16xf32>
      %106 = arith.truncf %105 : vector<16x16xf32> to vector<16x16xbf16>
      %c0_49 = arith.constant 0 : index
      %c0_50 = arith.constant 0 : index
      %107 = vector.load %arg11[%c0_49, %c0_50] : memref<16x16xbf16, #tpu.memory_space<vmem>>, vector<16x16xbf16>
      tpu.vector_store %arg11[%c0_49, %c0_50], %106 {strides = array<i32>} : memref<16x16xbf16, #tpu.memory_space<vmem>>, vector<16x16xbf16>,
      %c0_51 = arith.constant 0 : index
      %c0_52 = arith.constant 0 : index
      %108 = vector.load %arg4[%c0_51, %c0_52] : memref<128x128xf32, #tpu.memory_space<vmem>>, vector<128x128xf32>
      %cst_53 = arith.constant dense<0.000000e+00> : vector<16x128xf32>
      %109 = tpu.matmul %22, %108, %cst_53 {dimension_numbers = #tpu.dot_dimension_numbers<[1], [0], [0], [1], [0, 0, 1, 1], [], []>} : vector<16x128xf32>, vector<128x128xf32>, vector<16x128xf32> -> vector<16x128xf32>
      %c0_54 = arith.constant 0 : index
      %c0_55 = arith.constant 0 : index
      %110 = vector.load %arg5[%c0_54, %c0_55] : memref<1x128xf32, #tpu.memory_space<vmem>>, vector<1x128xf32>
      %111 = vector.broadcast %110 : vector<1x128xf32> to vector<16x128xf32>
      %112 = arith.addf %109, %111 : vector<16x128xf32>
      %cst_56 = arith.constant 0.000000e+00 : f32
      %113 = vector.broadcast %cst_56 : f32 to vector<16x128xf32>
      %114 = arith.maximumf %112, %113 : vector<16x128xf32>
      %c0_57 = arith.constant 0 : index
      %c0_58 = arith.constant 0 : index
      %115 = vector.load %arg13[%c0_57, %c0_58] : memref<16x128xf32, #tpu.memory_space<vmem>>, vector<16x128xf32>
      tpu.vector_store %arg13[%c0_57, %c0_58], %114 {strides = array<i32>} : memref<16x128xf32, #tpu.memory_space<vmem>>, vector<16x128xf32>,
      %c0_59 = arith.constant 0 : index
      %c0_60 = arith.constant 0 : index
      %116 = vector.load %arg12[%c0_59, %c0_60] : memref<16x128xf32, #tpu.memory_space<vmem>>, vector<16x128xf32>
      tpu.vector_store %arg12[%c0_59, %c0_60], %114 {strides = array<i32>} : memref<16x128xf32, #tpu.memory_space<vmem>>, vector<16x128xf32>,
      %cst_61 = arith.constant 0.000000e+00 : f32
      %117 = vector.broadcast %cst_61 : f32 to vector<16x128xf32>
      %c0_62 = arith.constant 0 : index
      %c0_63 = arith.constant 0 : index
      %118 = vector.load %arg10[%c0_62, %c0_63] : memref<16x128xf32, #tpu.memory_space<vmem>>, vector<16x128xf32>
      tpu.vector_store %arg10[%c0_62, %c0_63], %117 {strides = array<i32>} : memref<16x128xf32, #tpu.memory_space<vmem>>, vector<16x128xf32>,
    } else {
    }
    %c0 = arith.constant 0 : index
    %c0_1 = arith.constant 0 : index
    %3 = vector.load %arg11[%c0, %c0_1] : memref<16x16xbf16, #tpu.memory_space<vmem>>, vector<16x16xbf16>
    %c0_2 = arith.constant 0 : index
    %c0_3 = arith.constant 0 : index
    %4 = vector.load %arg12[%c0_2, %c0_3] : memref<16x128xf32, #tpu.memory_space<vmem>>, vector<16x128xf32>
    %5 = arith.truncf %4 : vector<16x128xf32> to vector<16x128xbf16>
    %cst = arith.constant dense<0.000000e+00> : vector<16x128xf32>
    %6 = tpu.matmul %3, %5, %cst {dimension_numbers = #tpu.dot_dimension_numbers<[1], [0], [0], [1], [0, 0, 1, 1], [], []>} : vector<16x16xbf16>, vector<16x128xbf16>, vector<16x128xf32> -> vector<16x128xf32>
    %cst_4 = arith.constant 0.899999976 : f32
    %7 = vector.broadcast %cst_4 : f32 to vector<16x128xf32>
    %8 = arith.mulf %7, %6 : vector<16x128xf32>
    %c0_5 = arith.constant 0 : index
    %c0_6 = arith.constant 0 : index
    %9 = vector.load %arg13[%c0_5, %c0_6] : memref<16x128xf32, #tpu.memory_space<vmem>>, vector<16x128xf32>
    %cst_7 = arith.constant 1.000000e-01 : f32
    %10 = vector.broadcast %cst_7 : f32 to vector<16x128xf32>
    %11 = arith.mulf %10, %9 : vector<16x128xf32>
    %12 = arith.addf %8, %11 : vector<16x128xf32>
    %c0_8 = arith.constant 0 : index
    %c0_9 = arith.constant 0 : index
    %c0_10 = arith.constant 0 : index
    %13 = vector.load %arg6[%c0_8, %c0_9, %c0_10] : memref<1x128x128xf32, #tpu.memory_space<vmem>>, vector<1x128x128xf32>
    %14 = vector.shape_cast %13 : vector<1x128x128xf32> to vector<128x128xf32>
    %cst_11 = arith.constant dense<0.000000e+00> : vector<16x128xf32>
    %15 = tpu.matmul %12, %14, %cst_11 {dimension_numbers = #tpu.dot_dimension_numbers<[1], [0], [0], [1], [0, 0, 1, 1], [], []>} : vector<16x128xf32>, vector<128x128xf32>, vector<16x128xf32> -> vector<16x128xf32>
    %cst_12 = arith.constant 0.000000e+00 : f32
    %16 = vector.broadcast %cst_12 : f32 to vector<16x128xf32>
    %17 = arith.maximumf %15, %16 : vector<16x128xf32>
    %c0_13 = arith.constant 0 : index
    %c0_14 = arith.constant 0 : index
    %18 = vector.load %arg12[%c0_13, %c0_14] : memref<16x128xf32, #tpu.memory_space<vmem>>, vector<16x128xf32>
    tpu.vector_store %arg12[%c0_13, %c0_14], %17 {strides = array<i32>} : memref<16x128xf32, #tpu.memory_space<vmem>>, vector<16x128xf32>,
    %c1_i32 = arith.constant 1 : i32
    %19 = arith.cmpi eq, %arg0, %c1_i32 : i32
    %20 = arith.extui %19 : i1 to i32
    %c0_i32_15 = arith.constant 0 : i32
    %21 = arith.cmpi ne, %20, %c0_i32_15 : i32
    scf.if %21 {
      %c0_16 = arith.constant 0 : index
      %c0_17 = arith.constant 0 : index
      %22 = vector.load %arg12[%c0_16, %c0_17] : memref<16x128xf32, #tpu.memory_space<vmem>>, vector<16x128xf32>
      %c0_18 = arith.constant 0 : index
      %c0_19 = arith.constant 0 : index
      %23 = vector.load %arg8[%c0_18, %c0_19] : memref<128x128xf32, #tpu.memory_space<vmem>>, vector<128x128xf32>
      %cst_20 = arith.constant dense<0.000000e+00> : vector<16x128xf32>
      %24 = tpu.matmul %22, %23, %cst_20 {dimension_numbers = #tpu.dot_dimension_numbers<[1], [0], [0], [1], [0, 0, 1, 1], [], []>} : vector<16x128xf32>, vector<128x128xf32>, vector<16x128xf32> -> vector<16x128xf32>
      %c0_21 = arith.constant 0 : index
      %c0_22 = arith.constant 0 : index
      %25 = vector.load %arg9[%c0_21, %c0_22] : memref<1x128xf32, #tpu.memory_space<vmem>>, vector<1x128xf32>
      %26 = vector.broadcast %25 : vector<1x128xf32> to vector<16x128xf32>
      %27 = arith.addf %24, %26 : vector<16x128xf32>
      %c0_23 = arith.constant 0 : index
      %c0_24 = arith.constant 0 : index
      %28 = vector.load %arg3[%c0_23, %c0_24] : memref<16x128xf32, #tpu.memory_space<vmem>>, vector<16x128xf32>
      %c0_25 = arith.constant 0 : index
      %c0_26 = arith.constant 0 : index
      %29 = vector.load %arg7[%c0_25, %c0_26] : memref<128x128xf32, #tpu.memory_space<vmem>>, vector<128x128xf32>
      %cst_27 = arith.constant dense<0.000000e+00> : vector<16x128xf32>
      %30 = tpu.matmul %28, %29, %cst_27 {dimension_numbers = #tpu.dot_dimension_numbers<[1], [0], [0], [1], [0, 0, 1, 1], [], []>} : vector<16x128xf32>, vector<128x128xf32>, vector<16x128xf32> -> vector<16x128xf32>
      %31 = arith.addf %27, %30 : vector<16x128xf32>
      %32 = tpu.iota {dimensions = array<i32: 1>} : vector<16x128xi32>
      %c8_i32 = arith.constant 8 : i32
      %33 = vector.broadcast %c8_i32 : i32 to vector<16x128xi32>
      %34 = arith.cmpi slt, %32, %33 : vector<16x128xi32>
      %cst_28 = arith.constant -1.000000e+30 : f32
      %35 = vector.broadcast %cst_28 : f32 to vector<16x128xf32>
      %36 = arith.select %34, %31, %35 : vector<16x128xi1>, vector<16x128xf32>
      %cst_29 = arith.constant dense<0xFF800000> : vector<16xf32>
      %37 = vector.multi_reduction <maximumf>, %36, %cst_29 [1] : vector<16x128xf32> to vector<16xf32>
      %38 = vector.shape_cast %37 : vector<16xf32> to vector<16x1xf32>
      %39 = vector.broadcast %38 : vector<16x1xf32> to vector<16x128xf32>
      %40 = arith.subf %36, %39 : vector<16x128xf32>
      %41 = math.exp %40 : vector<16x128xf32>
      %cst_30 = arith.constant dense<0.000000e+00> : vector<16xf32>
      %42 = vector.multi_reduction <add>, %41, %cst_30 [1] : vector<16x128xf32> to vector<16xf32>
      %43 = vector.shape_cast %42 : vector<16xf32> to vector<16x1xf32>
      %44 = math.log %43 : vector<16x1xf32>
      %45 = arith.addf %44, %38 : vector<16x1xf32>
      %46 = vector.broadcast %45 : vector<16x1xf32> to vector<16x128xf32>
      %47 = arith.subf %36, %46 : vector<16x128xf32>
      %c0_31 = arith.constant 0 : index
      %c0_32 = arith.constant 0 : index
      %48 = vector.load %arg10[%c0_31, %c0_32] : memref<16x128xf32, #tpu.memory_space<vmem>>, vector<16x128xf32>
      tpu.vector_store %arg10[%c0_31, %c0_32], %47 {strides = array<i32>} : memref<16x128xf32, #tpu.memory_space<vmem>>, vector<16x128xf32>,
    } else {
    }
    return
  }
  func.func @transform_0(%arg0: i32) -> (i32, i32) {
    %c0_i32 = arith.constant 0 : i32
    %c0_i32_0 = arith.constant 0 : i32
    %c0_i32_1 = arith.constant 0 : i32
    return %c0_i32, %c0_i32_0 : i32, i32
  }
  func.func @transform_1(%arg0: i32) -> (i32, i32) {
    %c0_i32 = arith.constant 0 : i32
    %c0_i32_0 = arith.constant 0 : i32
    %c0_i32_1 = arith.constant 0 : i32
    return %c0_i32, %c0_i32_0 : i32, i32
  }
  func.func @transform_2(%arg0: i32) -> (i32, i32) {
    %c0_i32 = arith.constant 0 : i32
    %c0_i32_0 = arith.constant 0 : i32
    %c0_i32_1 = arith.constant 0 : i32
    return %c0_i32, %c0_i32_0 : i32, i32
  }
  func.func @transform_3(%arg0: i32) -> (i32, i32) {
    %c0_i32 = arith.constant 0 : i32
    %c0_i32_0 = arith.constant 0 : i32
    %c0_i32_1 = arith.constant 0 : i32
    return %c0_i32, %c0_i32_0 : i32, i32
  }
  func.func @transform_4(%arg0: i32) -> (i32, i32) {
    %c0_i32 = arith.constant 0 : i32
    %c0_i32_0 = arith.constant 0 : i32
    %c0_i32_1 = arith.constant 0 : i32
    return %c0_i32, %c0_i32_0 : i32, i32
  }
  func.func @transform_5(%arg0: i32) -> (i32, i32, i32) {
    %c0_i32 = arith.constant 0 : i32
    %c0_i32_0 = arith.constant 0 : i32
    %c0_i32_1 = arith.constant 0 : i32
    return %arg0, %c0_i32, %c0_i32_0 : i32, i32, i32
  }
  func.func @transform_6(%arg0: i32) -> (i32, i32) {
    %c0_i32 = arith.constant 0 : i32
    %c0_i32_0 = arith.constant 0 : i32
    %c0_i32_1 = arith.constant 0 : i32
    return %c0_i32, %c0_i32_0 : i32, i32
  }
  func.func @transform_7(%arg0: i32) -> (i32, i32) {
    %c0_i32 = arith.constant 0 : i32
    %c0_i32_0 = arith.constant 0 : i32
    %c0_i32_1 = arith.constant 0 : i32
    return %c0_i32, %c0_i32_0 : i32, i32
  }
  func.func @transform_8(%arg0: i32) -> (i32, i32) {
    %c0_i32 = arith.constant 0 : i32
    %c0_i32_0 = arith.constant 0 : i32
    %c0_i32_1 = arith.constant 0 : i32
    return %c0_i32, %c0_i32_0 : i32, i32
  }
  func.func @transform_9(%arg0: i32) -> (i32, i32) {
    %c0_i32 = arith.constant 0 : i32
    %c0_i32_0 = arith.constant 0 : i32
    %c0_i32_1 = arith.constant 0 : i32
    return %c0_i32, %c0_i32_0 : i32, i32
  }
}

</mosaic_0001>

<bundles_post_ra>
// kernel: tpu_custom_call.1
= control target key start
LH: loop header
LB: loop body
LE: loop exit
PB: predicated region body
PF: predicated region fallthrough
CT: control target
= control target key end

     0   :  { %s1682_s0 = inlined_call_operand.vmem [shape: s32[16,1], index: 0, kind: input, shape index: {}]   ;;  %s1683_s1 = inlined_call_operand.vmem [shape: s32[1,16], index: 1, kind: input, shape index: {}]   ;;  %s1684_s2 = inlined_call_operand.vmem [shape: f32[16,128], index: 2, kind: input, shape index: {}]   ;;  %s1685_s3 = inlined_call_operand.hbm [shape: f32[128,128], index: 3, kind: input, shape index: {}]   ;;  %s1686_s4 = inlined_call_operand.vmem [shape: f32[1,128], index: 4, kind: input, shape index: {}]   ;;  %s1687_s5 = inlined_call_operand.hbm [shape: f32[2,128,128], index: 5, kind: input, shape index: {}]   ;;  %s1688_s6 = inlined_call_operand.hbm [shape: f32[128,128], index: 6, kind: input, shape index: {}]   ;;  %s1689_s7 = inlined_call_operand.hbm [shape: f32[128,128], index: 7, kind: input, shape index: {}]   ;;  %s1690_s8 = inlined_call_operand.vmem [shape: f32[1,128], index: 8, kind: input, shape index: {}]   ;;  %s1691_s9 = inlined_call_operand.hbm [shape: f32[16,128], index: 9, kind: output, shape index: {}]  }
   0x1   :  { %1693 = sst [smem:[#allocation19_spill]] %s1685_s3 }
   0x2   :  { %1694 = sst [smem:[#allocation20_spill]] %s1688_s6 }
   0x3   :  { %14 = vsyncpa [#allocation6], 0 }
   0x4   :  { %15 = vsyncpa [#allocation9], 0 }
   0x5   :  { %17 = vsyncpa [#allocation9 + $0x1], 0 }
   0x6   :  { %18 = vsyncpa [#allocation12], 0 }
   0x7   :  { %19 = vsyncpa [#allocation7], 0  ;;  %s1427_s30 = smov 0   ;;  %s1429_s10 = smov 0  }
   0x8   :  { %s1431_s11 = smov 0   ;;  %s1433_s12 = smov 0  }
   0x9 LB: > { %s1446_s13 = sadd.s32 4294967295, %s1365_s12   ;;  %p150_p0 = scmp.ne.s32.totalorder %s1357_s10, %s1353_s30  ;;  %s1365_s12 = sphi %s1433_s12, %s1705_s12   ;;  %s1361_s11 = sphi %s1431_s11, %s1704_s11   ;;  %s1357_s10 = sphi %s1429_s10, %s1703_s10   ;;  %s1353_s30 = sphi %s1427_s30, %s1702_s30  }
   0xa   : > { %p151_p1 = scmp.eq.s32.totalorder %s1446_s13, 0  ;;  %p962_p2 = scmp.ge.s32.totalorder %s1365_s12, 1 }
   0xb   : > { %p245_p3 = scmp.lt.s32.totalorder %s1365_s12, 3  ;;  %p963_p4 = scmp.ne.s32.totalorder %s1446_s13, 0 }
   0xc   : > { %p1455_p5 = por %p151_p1, %p150_p0  ;;  %s1697_s6 = sld [smem:[#allocation20_spill]] }
   0xd   : > { %p1459_p6 = pnand %p962_p2, %p245_p3  ;;  %s1367_s19 = smov [#allocation10]  }
   0xe   : > { %s284_s20 = sshll.u32 %s1367_s19, 4  ;;  %s1699_s3 = sld [smem:[#allocation19_spill]]  ;;  %s285_s20 = int_to_ptr.vmem [resolvable:$true] %s284_s20 }
   0xf   : > { %p1074_p7 = pneg %p1459_p6  ;;  %s1692_s25 = smov 128  }
  0x10   : > { %s1369_s26 = smov 8   ;;  %s1370_s27 = smov [#allocation5]  }
  0x11   : > { %p1470_p8 = pnand %p1074_p7, %p151_p1  ;;  %s267_s28 = sshll.u32 %s1370_s27, 4  ;;  %s268_s28 = int_to_ptr.vmem [resolvable:$true] %s267_s28 }
  0x12   : > { %s282_s18 = sshll.u32 %s1697_s6, 4  ;;  %s296_s16 = sshll.u32 %s1689_s7, 4  ;;  %s283_s18 = int_to_ptr.hbm [resolvable:$true] %s282_s18  ;;  %s297_s16 = int_to_ptr.hbm [resolvable:$true] %s296_s16 }
  0x13   : > { %1080 = dma.hbm_to_vmem [thread:$0]  (!%p1470_p8), %s283_s18, 2048, %s285_s20, [#allocation9], %s1692_s25, %s1692_s25, %s1369_s26  }
  0x14   : > { %s265_s24 = sshll.u32 %s1699_s3, 4  ;;  %s1371_s17 = smov [#allocation11]   ;;  %s266_s24 = int_to_ptr.hbm [resolvable:$true] %s265_s24 }
  0x15   : > { %1077 = dma.hbm_to_vmem [thread:$0]  (!%p1470_p8), %s266_s24, 2048, %s268_s28, [#allocation6], %s1692_s25, %s1692_s25, %s1369_s26  }
  0x16   : > { %s298_s18 = sshll.u32 %s1371_s17, 4  ;;  %s1491_s19 = sadd.s32 1, %s1365_s12   ;;  %s299_s18 = int_to_ptr.vmem [resolvable:$true] %s298_s18 }
  0x17   : > { %1083 = dma.hbm_to_vmem [thread:$0]  (!%p1470_p8), %s297_s16, 2048, %s299_s18, [#allocation12], %s1692_s25, %s1692_s25, %s1369_s26  }
  0x18   : > { %s134_s20 = ssub.s32 %s1365_s12, %s1491_s19  ;;  %s137_s22 = sadd.s32 1, %s1361_s11 }
  0x19   : > { %p135_p9 = scmp.eq.s32.totalorder %s134_s20, 0  ;;  %p144_p10 = scmp.ne.s32.totalorder %s1361_s11, %s1357_s10 }
  0x1a   : > { %p145_p11 = scmp.eq.s32.totalorder %s1365_s12, 0  ;;  %p1091_p13 = scmp.lt.s32.totalorder %s1365_s12, 2 }
  0x1b   : > { %s1505_s23 = scalar_select %p135_p9, %s1361_s11, %s137_s22  }
  0x1c   : > { %p146_p12 = por %p145_p11, %p144_p10  ;;  %s315_s24 = sand.u32 1, %s1365_s12  }
  0x1d   : > { %s317_s27 = sand.u32 1, %s1361_s11   ;;  %s990_s29 = sshll.u32 %s1365_s12, 7 }
  0x1e   : > { %s967_s28 = sshll.u32 %s317_s27, 7  ;;  %s324_s17 = scalar_lea.hbm %s1687_s5, %s990_s29 }
  0x1f   : > { %s325_s3 = sshll.u32 %s324_s17, 4  ;;  %s319_s6 = scalar_lea.vmem [#allocation8], %s967_s28  ;;  %s326_s3 = int_to_ptr.hbm [resolvable:$true] %s325_s3 }
  0x20   : > { %s327_s16 = sshll.u32 %s319_s6, 4  ;;  %p1514_p0 = pnand %p1091_p13, %p146_p12  ;;  %s328_s16 = int_to_ptr.vmem [resolvable:$true] %s327_s16 }
  0x21   : > { %s316_s20 = scalar_lea.sflag [#allocation9], %s315_s24  ;;  %s1257_s22 = sshra.s32 %s326_s3, 4  ;;  %s1258_s22 = int_to_ptr.hbm [resolvable:$true] %s1257_s22 }
  0x22   : > { %s1259_s25 = scalar_lea.hbm %s1258_s22, 128  ;;  %p1261_p3 = pneg %p1514_p0 }
  0x23   : > { %p1260_p2 = scmp.ne.s32.totalorder %s1258_s22, %s1259_s25  ;;  %s1264_s6 = scalar_lea.hbm %s1687_s5, 256 }
  0x24   : > { %p1265_p9 = scmp.lt.s32.totalorder %s1258_s22, %s1687_s5  ;;  %p1266_p10 = scmp.lt.s32.totalorder %s1264_s6, %s1259_s25 }
  0x25   : > { %p1262_p7 = pnand %p1261_p3, %p1260_p2 }
  0x26   : > { %p1267_p11 = por %p1266_p10, %p1265_p9 }
  0x27   : > { %p1263_p8 = pneg %p1262_p7 }
  0x29   : > { %p1268_p12 = pnand %p1267_p11, %p1263_p8 }
  0x2b   : > { %1271 = shalt.err (!%p1268_p12)
}
  0x2c   : > { %s1701_s24 = smov 128   ;;  %339 = sbr.rel (%p1459_p6) target bundleno = 1251 (0x4e3), region = 56 }
  0x2d   : > { %1087 = dma.hbm_to_vmem [thread:$0]  (!%p1514_p0), %s326_s3, 2048, %s328_s16, %s316_s20, %s1701_s24, %s1701_s24, %s1369_s26  }
  0x31   : > { %1332 = dma.done.wait (%p151_p1), [#allocation6], 2048  }
  0x32   : > { %1334 = vsyncadd (%p151_p1), [#allocation6], 4294965248  ;;  %s346_s25 = sand.u32 1, %s1446_s13   ;;  %s348_s30 = sand.u32 1, %s1357_s10  }
  0x33   : > { %s972_s21 = sshll.u32 %s348_s30, 7  ;;  %s347_s17 = scalar_lea.sflag [#allocation9], %s346_s25 }
  0x34   : > { %s1539_s18 = scalar_lea.vmem [#allocation8], %s972_s21 }
  0x35   : > { %1336 = dma.done.wait (%p1455_p5), %s347_s17, 2048  }
  0x36   : > { %1338 = vsyncadd (%p1455_p5), %s347_s17, 4294965248 }
  0x37   : > { %1340 = dma.done.wait (%p151_p1), [#allocation9], 2048  }
  0x38   : > { %1342 = vsyncadd (%p151_p1), [#allocation9], 4294965248 }
  0x39   : > { %1344 = dma.done.wait (%p151_p1), [#allocation12], 2048  }
  0x3a   : > { %1346 = vsyncadd (%p151_p1), [#allocation12], 4294965248  ;;  %395 = sbr.rel (%p963_p4) target bundleno = 537 (0x219), region = 76 }
  0x3f   : > { %v1558_v0 = vld [vmem:[%s1684_s2 + $0x8] sm:$0xff]  ;;  %v1565_v2 = vld [vmem:[%s1684_s2] sm:$0xff]  ;;  %v1372_v11 = vmov 0   ;;  %v632_v30 = vld [vmem:[#allocation5 + $0x70] sm:$0xff]  ;;  %v1373_v49 = vmov 0.0  }
  0x40   : > { %v399_v1 = vmul.f32 %v1558_v0, %v1558_v0  ;;  %v398_v3 = vmul.f32 %v1565_v2, %v1565_v2  ;;  %v523_v10 = vld [vmem:[%s1682_s0] sm:$0xff]  ;;  %1139 = vset.pattern.permute.xlu1 %v1372_v11  ;;  %1140 = vset.pattern.permute.xlu2 %v1372_v11  ;;  %v524_v15 = vld [vmem:[%s1682_s0 + $0x8] sm:$0xff]  ;;  %v631_v33 = vld [vmem:[#allocation5 + $0x68] sm:$0xff]  ;;  %667 = vst [vmem:[#allocation13] sm:$0xff] %v1373_v49 }
  0x41   : > { %vm535_vm0 = vcmp.ge.s32.totalorder %v523_v10, 0  ;;  %527 = vperm.xlu1 %1139, %v523_v10   ;;  %1141 = vset.pattern.permute.xlu0 %v1372_v11  ;;  %vm536_vm1 = vcmp.ge.s32.totalorder %v524_v15, 0  ;;  %v633_v29 = vld [vmem:[#allocation5 + $0x78] sm:$0xff]  ;;  %v630_v35 = vld [vmem:[#allocation5 + $0x60] sm:$0xff]  ;;  %v628_v39 = vld [vmem:[#allocation5 + $0x50] sm:$0xff]  ;;  %668 = vst [vmem:[#allocation13 + $0x8] sm:$0xff] %v1373_v49 }
  0x42   : > { %402 = vadd.xlane.f32.xlu0 %v399_v1  ;;  %v537_v13 = vsel %vm535_vm0, 1, %v1372_v11  ;;  %v538_v20 = vsel %vm536_vm1, 1, %v1372_v11  ;;  %992 = vmatpush.msra.mxu2 %v633_v29  ;;  %v629_v37 = vld [vmem:[#allocation5 + $0x58] sm:$0xff]  ;;  %v627_v44 = vld [vmem:[#allocation5 + $0x48] sm:$0xff]  ;;  %v626_v47 = vld [vmem:[#allocation5 + $0x40] sm:$0xff]  ;;  %vm559_vm0 = vcmask 130048  }
  0x43   : > { %540 = vperm.xlu2 %1140, %v537_v13   ;;  %638 = vmatpush.msra.mxu1 %v633_v29  ;;  %v625_v51 = vld [vmem:[#allocation5 + $0x38] sm:$0xff]  ;;  %v624_v55 = vld [vmem:[#allocation5 + $0x30] sm:$0xff]  ;;  %v623_v57 = vld [vmem:[#allocation5 + $0x28] sm:$0xff] }
  0x44   : > { %993 = vmatpush.msra.mxu2 %v632_v30  ;;  %v622_v61 = vld [vmem:[#allocation5 + $0x20] sm:$0xff]  ;;  %v1142_v29 = vld [vmem:[%s1683_s1] ss:$0 sm:$0xff] }
  0x45   : > { %639 = vmatpush.msra.mxu1 %v632_v30 }
  0x46   : > { %994 = vmatpush.msra.mxu2 %v631_v33 }
  0x47   : > { %640 = vmatpush.msra.mxu1 %v631_v33 }
  0x48   : > { %995 = vmatpush.msra.mxu2 %v630_v35 }
  0x49   : > { %530 = vperm.xlu1 %1139, %v524_v15   ;;  %641 = vmatpush.msra.mxu1 %v630_v35  ;;  %v619_v15 = vld [vmem:[#allocation5 + $0x8] sm:$0xff] }
  0x4a   : > { %400 = vadd.xlane.f32.xlu0 %v398_v3  ;;  %996 = vmatpush.msra.mxu2 %v629_v37  ;;  %v621_v3 = vld [vmem:[#allocation5 + $0x18] sm:$0xff] }
  0x4b   : > { %543 = vperm.xlu2 %1140, %v538_v20   ;;  %642 = vmatpush.msra.mxu1 %v629_v37  ;;  %v618_v20 = vld [vmem:[#allocation5] sm:$0xff] }
  0x4c   : > { %997 = vmatpush.msra.mxu2 %v628_v39 }
  0x4d   : > { %643 = vmatpush.msra.mxu1 %v628_v39 }
  0x4e   : > { %998 = vmatpush.msra.mxu2 %v627_v44 }
  0x4f   : > { %644 = vmatpush.msra.mxu1 %v627_v44 }
  0x50   : > { %999 = vmatpush.msra.mxu2 %v626_v47 }
  0x51   : > { %645 = vmatpush.msra.mxu1 %v626_v47 }
  0x52   : > { %1000 = vmatpush.msra.mxu2 %v625_v51 }
  0x53   : > { %646 = vmatpush.msra.mxu1 %v625_v51 }
  0x54   : > { %1001 = vmatpush.msra.mxu2 %v624_v55 }
  0x55   : > { %647 = vmatpush.msra.mxu1 %v624_v55 }
  0x56   : > { %1002 = vmatpush.msra.mxu2 %v623_v57 }
  0x57   : > { %648 = vmatpush.msra.mxu1 %v623_v57 }
  0x58   : > { %1003 = vmatpush.msra.mxu2 %v622_v61 }
  0x59   : > { %649 = vmatpush.msra.mxu1 %v622_v61 }
  0x5a   : > { %1004 = vmatpush.msra.mxu2 %v621_v3 }
  0x5b   : > { %650 = vmatpush.msra.mxu1 %v621_v3 }
  0xb3   : > { %v528_v30 = vpop.permute.xlu1 %527 }
  0xb4   : > { %vm533_vm10 = vcmp.eq.s32.totalorder %v528_v30, %v1142_v29 }
  0xb5   : > { %v403_v4 = vpop.xlane.xlu0 %402 }
  0xb6   : > { %v405_v5 = vmax.f32 %v403_v4, 1e-12 }
  0xb8   : > { %1144 = vrsqrt.f32 %v405_v5  ;;  %vm422_vm3 = vweird.f32 %v405_v5 }
  0xbd   : > { %v401_v6 = vpop.xlane.xlu0 %400 }
  0xbe   : > { %v1145_v7 = vpop.eup %1144  ;;  %v404_v8 = vmax.f32 %v401_v6, 1e-12 }
  0xbf   : > { %v417_v9 = vmul.f32 %v1145_v7, %v405_v5  ;;  %vm423_vm2 = vweird.f32 %v1145_v7 }
  0xc0   : > { %1146 = vrsqrt.f32 %v404_v8  ;;  %vm424_vm4 = vmor %vm422_vm3, %vm423_vm2  ;;  %vm412_vm6 = vweird.f32 %v404_v8 }
  0xc1   : > { %v418_v12 = vmul.f32 %v1145_v7, %v417_v9 }
  0xc3   : > { %v419_v14 = vmul.f32 0.5, %v418_v12 }
  0xc5   : > { %v420_v16 = vsub.f32 1.5, %v419_v14 }
  0xc6   : > { %v1147_v17 = vpop.eup %1146 }
  0xc7   : > { %v407_v18 = vmul.f32 %v1147_v17, %v404_v8  ;;  %v421_v19 = vmul.f32 %v1145_v7, %v420_v16  ;;  %vm413_vm5 = vweird.f32 %v1147_v17 }
  0xc8   : > { %vm414_vm7 = vmor %vm412_vm6, %vm413_vm5 }
  0xc9   : > { %v408_v21 = vmul.f32 %v1147_v17, %v407_v18  ;;  %v425_v22 = vsel %vm424_vm4, %v1145_v7, %v421_v19  ;;  %v620_v7 = vld [vmem:[#allocation5 + $0x10] sm:$0xff] }
  0xca   : > { %v427_v23 = vmul.f32 %v425_v22, %v1558_v0  ;;  %1005 = vmatpush.msra.mxu2 %v620_v7  ;;  %651 = vmatpush.msra.mxu1 %v620_v7 }
  0xcb   : > { %v409_v24 = vmul.f32 0.5, %v408_v21 }
  0xcc   : > { %442 = vmatpush.xpose.msra.mxu0 %v427_v23  ;;  %1006 = vmatpush.msra.mxu2 %v619_v15 }
  0xcd   : > { %v410_v25 = vsub.f32 1.5, %v409_v24  ;;  %652 = vmatpush.msra.mxu1 %v619_v15 }
  0xce   : > { %1007 = vmatpush.msra.mxu2 %v618_v20 }
  0xcf   : > { %v411_v26 = vmul.f32 %v1147_v17, %v410_v25  ;;  %653 = vmatpush.msra.mxu1 %v618_v20  ;;  %657 = vmatmul.f32.vlgmr.msra.gmra.mxu2 %v1558_v0 }
  0xd0   : > { %654 = vmatmul.f32.vlgmr.msra.gmra.mxu1 %v1565_v2 }
  0xd1   : > { %v415_v27 = vsel %vm414_vm7, %v1147_v17, %v411_v26 }
  0xd2   : > { %v426_v28 = vmul.f32 %v415_v27, %v1565_v2 }
  0xd4   : > { %443 = vmatpush.xpose.msra.mxu0 %v426_v28 }
  0xd7   : > { %444 = vmatmul.f32.vlgmr.msra.gmra.mxu0 %v426_v28 }
  0xdf   : > { %447 = vmatmul.f32.gmra.mxu0 %v427_v23 }
 0x154   : > { %v445_v31 = vpop.f32.mrf.mxu0 }
 0x155   : > { %v976_v32 = vclamps-f32 %v445_v31, 1.0  ;;  %v541_v31 = vpop.permute.xlu2 %540 }
 0x156   : > { %vm545_vm11 = vcmp.eq.s32.totalorder %v541_v31, 1 }
 0x157   : > { %v1577_v34 = vmul.f32 0.99999, %v976_v32  ;;  %vm547_vm14 = vmand %vm533_vm10, %vm545_vm11 }
 0x159   : > { %v1580_v36 = vand.u32 2147483647, %v1577_v34  ;;  %vm517_vm13 = vcmp.ge.f32.partialorder %v1577_v34, 0.0 }
 0x15b   : > { %v487_v38 = vsub.f32 1.0, %v1580_v36  ;;  %v459_v40 = vmul.f32 -0.0012624911, %v1580_v36 }
 0x15c   : > { %v448_v41 = vpop.f32.mrf.mxu0 }
 0x15d   : > { %v1584_v42 = vmax.f32 %v487_v38, 0.0  ;;  %v977_v43 = vclamps-f32 %v448_v41, 1.0  ;;  %v461_v45 = vadd.f32 0.00667009, %v459_v40  ;;  %v544_v55 = vpop.permute.xlu2 %543 }
 0x15e   : > { %vm546_vm2 = vcmp.eq.s32.totalorder %v544_v55, 1 }
 0x15f   : > { %v1586_v46 = vmul.f32 0.99999, %v977_v43  ;;  %v463_v48 = vmul.f32 %v461_v45, %v1580_v36  ;;  %1148 = vrsqrt.f32 %v1584_v42  ;;  %vm498_vm8 = vcmp.eq.f32.partialorder %v1584_v42, inf }
 0x160   : > { %v501_v2 = vand.u32 2147483648, %v1584_v42  ;;  %vm500_vm9 = vcmp.eq.f32.partialorder %v1584_v42, 0.0 }
 0x161   : > { %v1592_v50 = vand.u32 2147483647, %v1586_v46  ;;  %v465_v52 = vadd.f32 -0.017088126, %v463_v48  ;;  %vm518_vm3 = vcmp.ge.f32.partialorder %v1586_v46, 0.0 }
 0x163   : > { %v460_v53 = vmul.f32 -0.0012624911, %v1592_v50  ;;  %v488_v54 = vsub.f32 1.0, %v1592_v50  ;;  %v467_v56 = vmul.f32 %v465_v52, %v1580_v36 }
 0x165   : > { %v1149_v58 = vpop.eup %1148  ;;  %v462_v59 = vadd.f32 0.00667009, %v460_v53  ;;  %v1598_v60 = vmax.f32 %v488_v54, 0.0  ;;  %v469_v62 = vadd.f32 0.03089188, %v467_v56  ;;  %v978_v53 = vsel %vm547_vm14, 1.0, %v1373_v49  ;;  %v531_v54 = vpop.permute.xlu1 %530 }
 0x166   : > { %v492_v63 = vmul.f32 %v1149_v58, %v1584_v42  ;;  %vm534_vm1 = vcmp.eq.s32.totalorder %v531_v54, %v1142_v29  ;;  %vm615_vm14 = vcmask 125952  }
 0x167   : > { %v464_v1 = vmul.f32 %v462_v59, %v1592_v50  ;;  %1150 = vrsqrt.f32 %v1598_v60  ;;  %v471_v4 = vmul.f32 %v469_v62, %v1580_v36  ;;  %vm510_vm12 = vcmp.eq.f32.partialorder %v1598_v60, inf  ;;  %vm548_vm4 = vmand %vm534_vm1, %vm546_vm2 }
 0x168   : > { %v493_v5 = vmul.f32 %v1149_v58, %v492_v63  ;;  %vm512_vm15 = vcmp.eq.f32.partialorder %v1598_v60, 0.0  ;;  %v979_v62 = vsel %vm548_vm4, 1.0, %v1373_v49  ;;  %v658_v49 = vpop.f32.mrf.mxu2 }
 0x169   : > { %v466_v6 = vadd.f32 -0.017088126, %v464_v1  ;;  %v473_v8 = vadd.f32 -0.050174303, %v471_v4 }
 0x16a   : > { %v494_v9 = vmul.f32 0.5, %v493_v5 }
 0x16b   : > { %v468_v10 = vmul.f32 %v466_v6, %v1592_v50  ;;  %v475_v11 = vmul.f32 %v473_v8, %v1580_v36 }
 0x16c   : > { %v495_v12 = vsub.f32 1.5, %v494_v9 }
 0x16d   : > { %v1151_v13 = vpop.eup %1150  ;;  %v470_v14 = vadd.f32 0.03089188, %v468_v10  ;;  %v477_v17 = vadd.f32 0.08897899, %v475_v11  ;;  %v1143_v10 = vld [vmem:[%s1686_s4] ss:$0 sm:$0xff]  ;;  %v655_v11 = vpop.f32.mrf.mxu1 }
 0x16e   : > { %v504_v16 = vmul.f32 %v1151_v13, %v1598_v60  ;;  %v496_v18 = vmul.f32 %v1149_v58, %v495_v12 }
 0x16f   : > { %v472_v19 = vmul.f32 %v470_v14, %v1592_v50  ;;  %v479_v22 = vmul.f32 %v477_v17, %v1580_v36  ;;  %v659_v14 = vadd.f32 %v1143_v10, %v658_v49 }
 0x170   : > { %v505_v21 = vmul.f32 %v1151_v13, %v504_v16  ;;  %v497_v23 = vmul.f32 %v496_v18, %v1584_v42 }
 0x171   : > { %v474_v24 = vadd.f32 -0.050174303, %v472_v19  ;;  %v481_v26 = vadd.f32 -0.2145988, %v479_v22  ;;  %v662_v17 = vmax.f32 %v659_v14, 0.0 }
 0x172   : > { %v506_v25 = vmul.f32 0.5, %v505_v21  ;;  %v499_v33 = vsel %vm498_vm8, %v1584_v42, %v497_v23  ;;  %v513_v42 = vand.u32 2147483648, %v1598_v60 }
 0x173   : > { %v476_v27 = vmul.f32 %v474_v24, %v1592_v50  ;;  %v483_v32 = vmul.f32 %v481_v26, %v1580_v36  ;;  %v502_v39 = vsel %vm500_vm9, %v501_v2, %v499_v33  ;;  %664 = vst [vmem:[#allocation4] sm:$0xff] %v662_v17 }
 0x174   : > { %v507_v28 = vsub.f32 1.5, %v506_v25  ;;  %666 = vst [vmem:[#allocation3 + $0x8] sm:$0xff] %v662_v17 }
 0x175   : > { %v478_v0 = vadd.f32 0.08897899, %v476_v27  ;;  %v485_v37 = vadd.f32 1.5707963, %v483_v32 }
 0x176   : > { %v508_v35 = vmul.f32 %v1151_v13, %v507_v28  ;;  %v656_v13 = vadd.f32 %v1143_v10, %v655_v11 }
 0x177   : > { %v480_v38 = vmul.f32 %v478_v0, %v1592_v50  ;;  %v515_v41 = vmul.f32 %v502_v39, %v485_v37 }
 0x178   : > { %v509_v40 = vmul.f32 %v508_v35, %v1598_v60  ;;  %v661_v16 = vmax.f32 %v656_v13, 0.0 }
 0x179   : > { %v482_v43 = vadd.f32 -0.2145988, %v480_v38  ;;  %v519_v36 = vsub.f32 3.1415927, %v515_v41 }
 0x17a   : > { %v511_v45 = vsel %vm510_vm12, %v1598_v60, %v509_v40  ;;  %663 = vst [vmem:[#allocation4 + $0x8] sm:$0xff] %v661_v16 }
 0x17b   : > { %v484_v44 = vmul.f32 %v482_v43, %v1592_v50  ;;  %v521_v47 = vsel %vm517_vm13, %v515_v41, %v519_v36  ;;  %v514_v52 = vsel %vm512_vm15, %v513_v42, %v511_v45  ;;  %665 = vst [vmem:[#allocation3] sm:$0xff] %v661_v16 }
 0x17c   : > { %v553_v51 = vmul.f32 0.31830987, %v521_v47 }
 0x17d   : > { %v486_v48 = vadd.f32 1.5707963, %v484_v44 }
 0x17e   : > { %v555_v57 = vsub.f32 1.0, %v553_v51 }
 0x17f   : > { %v516_v56 = vmul.f32 %v514_v52, %v486_v48 }
 0x180   : > { %v557_v50 = vmul.f32 %v978_v53, %v555_v57 }
 0x181   : > { %v520_v34 = vsub.f32 3.1415927, %v516_v56 }
 0x182   : > { %v560_v59 = vsel %vm559_vm0, %v557_v50, 0.0 }
 0x183   : > { %v522_v58 = vsel %vm518_vm3, %v516_v56, %v520_v34  ;;  %561 = vadd.xlane.f32.xlu0 %v560_v59 }
 0x184   : > { %v554_v61 = vmul.f32 0.31830987, %v522_v58 }
 0x186   : > { %v556_v60 = vsub.f32 1.0, %v554_v61 }
 0x188   : > { %v1632_v63 = vmul.f32 %v979_v62, %v556_v60 }
 0x18a   : > { %v563_v1 = vsel %vm559_vm0, %v1632_v63, 0.0 }
 0x18b   : > { %564 = vadd.xlane.f32.xlu1 %v563_v1  ;;  %v566_v3 = vadd.f32 %v563_v1, %v560_v59 }
 0x18d   : > { %v567_v4 = vrot.slane %v566_v3, 4 }
 0x18f   : > { %v568_v5 = vadd.f32 %v567_v4, %v566_v3 }
 0x191   : > { %v569_v6 = vrot.slane %v568_v5, 2 }
 0x193   : > { %v570_v7 = vadd.f32 %v569_v6, %v568_v5 }
 0x195   : > { %v571_v8 = vrot.slane %v570_v7, 1 }
 0x197   : > { %v572_v46 = vadd.f32 %v571_v8, %v570_v7 }
 0x199   : > { %1152 = vrsqrt.f32 %v572_v46  ;;  %vm604_vm7 = vweird.f32 %v572_v46  ;;  %vm597_vm12 = vcmp.gt.f32.partialorder %v572_v46, 0.0 }
 0x19f   : > { %v1153_v9 = vpop.eup %1152 }
 0x1a0   : > { %v599_v12 = vmul.f32 %v1153_v9, %v572_v46  ;;  %vm605_vm5 = vweird.f32 %v1153_v9 }
 0x1a1   : > { %vm606_vm9 = vmor %vm604_vm7, %vm605_vm5 }
 0x1a2   : > { %v600_v18 = vmul.f32 %v1153_v9, %v599_v12 }
 0x1a4   : > { %v601_v19 = vmul.f32 0.5, %v600_v18 }
 0x1a6   : > { %v602_v24 = vsub.f32 1.5, %v601_v19 }
 0x1a8   : > { %v603_v28 = vmul.f32 %v1153_v9, %v602_v24 }
 0x1aa   : > { %v607_v33 = vsel %vm606_vm9, %v1153_v9, %v603_v28 }
 0x1ab   : > { %v608_v37 = vsel %vm597_vm12, %v607_v33, 0.0 }
 0x1f6   : > { %v562_v15 = vpop.xlane.xlu0 %561 }
 0x1f7   : > { %1154 = vrsqrt.f32 %v562_v15  ;;  %vm581_vm8 = vweird.f32 %v562_v15  ;;  %vm573_vm11 = vcmp.gt.f32.partialorder %v562_v15, 0.0 }
 0x1fd   : > { %v1155_v20 = vpop.eup %1154 }
 0x1fe   : > { %v565_v21 = vpop.xlane.xlu1 %564  ;;  %v576_v22 = vmul.f32 %v1155_v20, %v562_v15  ;;  %vm582_vm6 = vweird.f32 %v1155_v20 }
 0x1ff   : > { %1156 = vrsqrt.f32 %v565_v21  ;;  %vm583_vm10 = vmor %vm581_vm8, %vm582_vm6  ;;  %vm591_vm15 = vweird.f32 %v565_v21  ;;  %vm574_vm1 = vcmp.gt.f32.partialorder %v565_v21, 0.0 }
 0x200   : > { %v577_v23 = vmul.f32 %v1155_v20, %v576_v22 }
 0x202   : > { %v578_v25 = vmul.f32 0.5, %v577_v23 }
 0x204   : > { %v579_v27 = vsub.f32 1.5, %v578_v25 }
 0x205   : > { %v1157_v26 = vpop.eup %1156 }
 0x206   : > { %v586_v29 = vmul.f32 %v1157_v26, %v565_v21  ;;  %v580_v30 = vmul.f32 %v1155_v20, %v579_v27  ;;  %vm592_vm13 = vweird.f32 %v1157_v26 }
 0x207   : > { %vm593_vm0 = vmor %vm591_vm15, %vm592_vm13 }
 0x208   : > { %v587_v31 = vmul.f32 %v1157_v26, %v586_v29  ;;  %v584_v32 = vsel %vm583_vm10, %v1155_v20, %v580_v30 }
 0x209   : > { %v595_v0 = vsel %vm573_vm11, %v584_v32, 0.0 }
 0x20a   : > { %v588_v2 = vmul.f32 0.5, %v587_v31  ;;  %v609_v35 = vmul.f32 %v595_v0, %v557_v50 }
 0x20c   : > { %v589_v38 = vsub.f32 1.5, %v588_v2  ;;  %v611_v39 = vmul.f32 %v609_v35, %v608_v37 }
 0x20e   : > { %v590_v40 = vmul.f32 %v1157_v26, %v589_v38  ;;  %v613_v41 = vpack.c.bf16 %v611_v39, %v611_v39 }
 0x210   : > { %v594_v43 = vsel %vm593_vm0, %v1157_v26, %v590_v40  ;;  %616 = vst.msk [vmem:[#allocation2] sm:$0xf] %vm615_vm14, %v613_v41 }
 0x211   : > { %v596_v36 = vsel %vm574_vm1, %v594_v43, 0.0 }
 0x212   : > { %v610_v44 = vmul.f32 %v596_v36, %v1632_v63 }
 0x214   : > { %v612_v45 = vmul.f32 %v610_v44, %v608_v37 }
 0x216   : > { %v614_v42 = vpack.c.bf16 %v612_v45, %v612_v45 }
 0x218   : > { %617 = vst.msk [vmem:[#allocation2 + $0x4] sm:$0xf] %vm615_vm14, %v614_v42 }
 0x219 PF: > { %v671_v47 = vld [vmem:[#allocation3] sm:$0xff]  ;;  %v672_v48 = vld [vmem:[#allocation3 + $0x8] sm:$0xff]  ;;  %v720_v52 = vld [vmem:[%s1539_s18 + $0x78] sm:$0xff]  ;;  %vm679_vm2 = vcmask 130048   ;;  %p985_p1 = scmp.ne.s32.totalorder %s1446_s13, 1 }
 0x21a   : > { %v673_v51 = vpack.c.bf16 %v672_v48, %v671_v47  ;;  %v719_v53 = vld [vmem:[%s1539_s18 + $0x70] sm:$0xff]  ;;  %721 = vmatpush.msra.mxu1 %v720_v52  ;;  %1008 = vmatpush.msra.mxu2 %v720_v52  ;;  %v718_v55 = vld [vmem:[%s1539_s18 + $0x68] sm:$0xff]  ;;  %v717_v56 = vld [vmem:[%s1539_s18 + $0x60] sm:$0xff] }
 0x21b   : > { %v716_v57 = vld [vmem:[%s1539_s18 + $0x58] sm:$0xff]  ;;  %v715_v34 = vld [vmem:[%s1539_s18 + $0x50] sm:$0xff]  ;;  %v714_v50 = vld [vmem:[%s1539_s18 + $0x48] sm:$0xff] }
 0x21c   : > { %690 = vmatpush.bf16.msra.mxu0 %v673_v51  ;;  %722 = vmatpush.msra.mxu1 %v719_v53  ;;  %v713_v58 = vld [vmem:[%s1539_s18 + $0x40] sm:$0xff]  ;;  %v712_v59 = vld [vmem:[%s1539_s18 + $0x38] sm:$0xff]  ;;  %v711_v61 = vld [vmem:[%s1539_s18 + $0x30] sm:$0xff] }
 0x21d   : > { %1009 = vmatpush.msra.mxu2 %v719_v53  ;;  %v710_v60 = vld [vmem:[%s1539_s18 + $0x28] sm:$0xff]  ;;  %v709_v62 = vld [vmem:[%s1539_s18 + $0x20] sm:$0xff]  ;;  %v708_v63 = vld [vmem:[%s1539_s18 + $0x18] sm:$0xff] }
 0x21e   : > { %723 = vmatpush.msra.mxu1 %v718_v55  ;;  %v707_v1 = vld [vmem:[%s1539_s18 + $0x10] sm:$0xff]  ;;  %v706_v3 = vld [vmem:[%s1539_s18 + $0x8] sm:$0xff]  ;;  %v705_v4 = vld [vmem:[%s1539_s18] sm:$0xff] }
 0x21f   : > { %v991_v54 = vld [vmem:[#allocation2] sm:$0xff]  ;;  %1010 = vmatpush.msra.mxu2 %v718_v55  ;;  %v700_v9 = vld [vmem:[#allocation4] sm:$0xff] }
 0x220   : > { %984 = vmatmul.msk.bf16.vlgmr.msra.gmra.mxu0 %vm679_vm2, %v991_v54  ;;  %724 = vmatpush.msra.mxu1 %v717_v56  ;;  %v699_v5 = vld [vmem:[#allocation4 + $0x8] sm:$0xff]  ;;  %v702_v10 = vmul.f32 0.1, %v700_v9 }
 0x221   : > { %1011 = vmatpush.msra.mxu2 %v717_v56  ;;  %v701_v6 = vmul.f32 0.1, %v699_v5 }
 0x222   : > { %725 = vmatpush.msra.mxu1 %v716_v57 }
 0x223   : > { %1012 = vmatpush.msra.mxu2 %v716_v57 }
 0x224   : > { %726 = vmatpush.msra.mxu1 %v715_v34 }
 0x225   : > { %1013 = vmatpush.msra.mxu2 %v715_v34 }
 0x226   : > { %727 = vmatpush.msra.mxu1 %v714_v50 }
 0x227   : > { %1014 = vmatpush.msra.mxu2 %v714_v50 }
 0x228   : > { %728 = vmatpush.msra.mxu1 %v713_v58 }
 0x229   : > { %1015 = vmatpush.msra.mxu2 %v713_v58 }
 0x22a   : > { %729 = vmatpush.msra.mxu1 %v712_v59 }
 0x22b   : > { %1016 = vmatpush.msra.mxu2 %v712_v59 }
 0x22c   : > { %730 = vmatpush.msra.mxu1 %v711_v61 }
 0x22d   : > { %1017 = vmatpush.msra.mxu2 %v711_v61 }
 0x22e   : > { %731 = vmatpush.msra.mxu1 %v710_v60 }
 0x22f   : > { %1018 = vmatpush.msra.mxu2 %v710_v60 }
 0x230   : > { %732 = vmatpush.msra.mxu1 %v709_v62 }
 0x231   : > { %1019 = vmatpush.msra.mxu2 %v709_v62 }
 0x232   : > { %733 = vmatpush.msra.mxu1 %v708_v63 }
 0x233   : > { %1020 = vmatpush.msra.mxu2 %v708_v63 }
 0x234   : > { %734 = vmatpush.msra.mxu1 %v707_v1 }
 0x235   : > { %1021 = vmatpush.msra.mxu2 %v707_v1 }
 0x236   : > { %735 = vmatpush.msra.mxu1 %v706_v3 }
 0x237   : > { %1022 = vmatpush.msra.mxu2 %v706_v3 }
 0x238   : > { %736 = vmatpush.msra.mxu1 %v705_v4 }
 0x239   : > { %1023 = vmatpush.msra.mxu2 %v705_v4 }
 0x29d   : > { %v692_v7 = vpop.f32.mrf.mxu0 }
 0x29e   : > { %v697_v8 = vmul.f32 0.9, %v692_v7 }
 0x2a0   : > { %v703_v46 = vadd.f32 %v701_v6, %v697_v8 }
 0x2a2   : > { %737 = vmatmul.f32.vlgmr.msra.gmra.mxu1 %v703_v46 }
 0x2a5   : > { %v694_v11 = vpop.f32.mrf.mxu0 }
 0x2a6   : > { %v698_v49 = vmul.f32 0.9, %v694_v11 }
 0x2a8   : > { %v704_v12 = vadd.f32 %v702_v10, %v698_v49 }
 0x2aa   : > { %740 = vmatmul.f32.vlgmr.msra.gmra.mxu2 %v704_v12 }
 0x31f   : > { %v738_v13 = vpop.f32.mrf.mxu1 }
 0x320   : > { %v744_v14 = vmax.f32 %v738_v13, 0.0 }
 0x322   : > { %746 = vst [vmem:[#allocation3] sm:$0xff] %v744_v14 }
 0x32c   : > { %751 = sbr.rel (%p985_p1) target bundleno = 1245 (0x4dd), region = 80 }
 0x32d   : > { %v741_v15 = vpop.f32.mrf.mxu2 }
 0x32e   : > { %v745_v16 = vmax.f32 %v741_v15, 0.0 }
 0x330   : > { %747 = vst [vmem:[#allocation3 + $0x8] sm:$0xff] %v745_v16 }
 0x331   : > { %v769_v17 = vld [vmem:[#allocation11 + $0x78] sm:$0xff]  ;;  %v768_v18 = vld [vmem:[#allocation11 + $0x70] sm:$0xff]  ;;  %v767_v21 = vld [vmem:[#allocation11 + $0x68] sm:$0xff]  ;;  %v840_v55 = vlaneseq }
 0x332   : > { %v814_v19 = vld [vmem:[#allocation10 + $0x78] sm:$0xff]  ;;  %774 = vmatpush.msra.mxu0 %v769_v17  ;;  %1024 = vmatpush.msra.mxu2 %v769_v17  ;;  %v813_v20 = vld [vmem:[#allocation10 + $0x70] sm:$0xff]  ;;  %v812_v22 = vld [vmem:[#allocation10 + $0x68] sm:$0xff] }
 0x333   : > { %815 = vmatpush.msra.mxu1 %v814_v19  ;;  %1040 = vmatpush.msra.mxu3 %v814_v19  ;;  %v766_v23 = vld [vmem:[#allocation11 + $0x60] sm:$0xff]  ;;  %v765_v25 = vld [vmem:[#allocation11 + $0x58] sm:$0xff]  ;;  %v764_v27 = vld [vmem:[#allocation11 + $0x50] sm:$0xff]  ;;  %v841_v57 = vand.u32 127, %v840_v55 }
 0x334   : > { %775 = vmatpush.msra.mxu0 %v768_v18  ;;  %1025 = vmatpush.msra.mxu2 %v768_v18  ;;  %v811_v24 = vld [vmem:[#allocation10 + $0x60] sm:$0xff]  ;;  %v810_v26 = vld [vmem:[#allocation10 + $0x58] sm:$0xff]  ;;  %v809_v28 = vld [vmem:[#allocation10 + $0x50] sm:$0xff] }
 0x335   : > { %816 = vmatpush.msra.mxu1 %v813_v20  ;;  %1041 = vmatpush.msra.mxu3 %v813_v20  ;;  %v763_v29 = vld [vmem:[#allocation11 + $0x48] sm:$0xff]  ;;  %v762_v31 = vld [vmem:[#allocation11 + $0x40] sm:$0xff]  ;;  %v761_v33 = vld [vmem:[#allocation11 + $0x38] sm:$0xff]  ;;  %vm842_vm3 = vcmp.lt.s32.totalorder %v841_v57, 8 }
 0x336   : > { %776 = vmatpush.msra.mxu0 %v767_v21  ;;  %1026 = vmatpush.msra.mxu2 %v767_v21  ;;  %v808_v30 = vld [vmem:[#allocation10 + $0x48] sm:$0xff]  ;;  %v807_v32 = vld [vmem:[#allocation10 + $0x40] sm:$0xff]  ;;  %v806_v0 = vld [vmem:[#allocation10 + $0x38] sm:$0xff] }
 0x337   : > { %817 = vmatpush.msra.mxu1 %v812_v22  ;;  %1042 = vmatpush.msra.mxu3 %v812_v22  ;;  %v760_v2 = vld [vmem:[#allocation11 + $0x30] sm:$0xff]  ;;  %v759_v37 = vld [vmem:[#allocation11 + $0x28] sm:$0xff]  ;;  %v758_v39 = vld [vmem:[#allocation11 + $0x20] sm:$0xff] }
 0x338   : > { %777 = vmatpush.msra.mxu0 %v766_v23  ;;  %1027 = vmatpush.msra.mxu2 %v766_v23  ;;  %v805_v35 = vld [vmem:[#allocation10 + $0x30] sm:$0xff]  ;;  %v804_v38 = vld [vmem:[#allocation10 + $0x28] sm:$0xff]  ;;  %v803_v40 = vld [vmem:[#allocation10 + $0x20] sm:$0xff] }
 0x339   : > { %818 = vmatpush.msra.mxu1 %v811_v24  ;;  %1043 = vmatpush.msra.mxu3 %v811_v24  ;;  %v757_v41 = vld [vmem:[#allocation11 + $0x18] sm:$0xff]  ;;  %v756_v36 = vld [vmem:[#allocation11 + $0x10] sm:$0xff]  ;;  %v755_v45 = vld [vmem:[#allocation11 + $0x8] sm:$0xff] }
 0x33a   : > { %778 = vmatpush.msra.mxu0 %v765_v25  ;;  %1028 = vmatpush.msra.mxu2 %v765_v25  ;;  %v802_v43 = vld [vmem:[#allocation10 + $0x18] sm:$0xff]  ;;  %v801_v44 = vld [vmem:[#allocation10 + $0x10] sm:$0xff]  ;;  %v800_v42 = vld [vmem:[#allocation10 + $0x8] sm:$0xff] }
 0x33b   : > { %819 = vmatpush.msra.mxu1 %v810_v26  ;;  %1044 = vmatpush.msra.mxu3 %v810_v26  ;;  %v754_v47 = vld [vmem:[#allocation11] sm:$0xff]  ;;  %v753_v52 = vld [vmem:[#allocation3 + $0x8] sm:$0xff]  ;;  %v797_v53 = vld [vmem:[%s1684_s2] sm:$0xff] }
 0x33c   : > { %779 = vmatpush.msra.mxu0 %v764_v27  ;;  %1029 = vmatpush.msra.mxu2 %v764_v27  ;;  %v752_v48 = vld [vmem:[#allocation3] sm:$0xff]  ;;  %v1158_v56 = vld [vmem:[%s1690_s8] ss:$0 sm:$0xff] }
 0x33d   : > { %820 = vmatpush.msra.mxu1 %v809_v28  ;;  %1045 = vmatpush.msra.mxu3 %v809_v28  ;;  %v799_v51 = vld [vmem:[#allocation10] sm:$0xff] }
 0x33e   : > { %780 = vmatpush.msra.mxu0 %v763_v29  ;;  %1030 = vmatpush.msra.mxu2 %v763_v29  ;;  %v798_v54 = vld [vmem:[%s1684_s2 + $0x8] sm:$0xff] }
 0x33f   : > { %821 = vmatpush.msra.mxu1 %v808_v30  ;;  %1046 = vmatpush.msra.mxu3 %v808_v30 }
 0x340   : > { %781 = vmatpush.msra.mxu0 %v762_v31  ;;  %1031 = vmatpush.msra.mxu2 %v762_v31 }
 0x341   : > { %822 = vmatpush.msra.mxu1 %v807_v32  ;;  %1047 = vmatpush.msra.mxu3 %v807_v32 }
 0x342   : > { %782 = vmatpush.msra.mxu0 %v761_v33  ;;  %1032 = vmatpush.msra.mxu2 %v761_v33 }
 0x343   : > { %823 = vmatpush.msra.mxu1 %v806_v0  ;;  %1048 = vmatpush.msra.mxu3 %v806_v0 }
 0x344   : > { %783 = vmatpush.msra.mxu0 %v760_v2  ;;  %1033 = vmatpush.msra.mxu2 %v760_v2 }
 0x345   : > { %824 = vmatpush.msra.mxu1 %v805_v35  ;;  %1049 = vmatpush.msra.mxu3 %v805_v35 }
 0x346   : > { %784 = vmatpush.msra.mxu0 %v759_v37  ;;  %1034 = vmatpush.msra.mxu2 %v759_v37 }
 0x347   : > { %825 = vmatpush.msra.mxu1 %v804_v38  ;;  %1050 = vmatpush.msra.mxu3 %v804_v38 }
 0x348   : > { %785 = vmatpush.msra.mxu0 %v758_v39  ;;  %1035 = vmatpush.msra.mxu2 %v758_v39 }
 0x349   : > { %826 = vmatpush.msra.mxu1 %v803_v40  ;;  %1051 = vmatpush.msra.mxu3 %v803_v40 }
 0x34a   : > { %786 = vmatpush.msra.mxu0 %v757_v41  ;;  %1036 = vmatpush.msra.mxu2 %v757_v41 }
 0x34b   : > { %827 = vmatpush.msra.mxu1 %v802_v43  ;;  %1052 = vmatpush.msra.mxu3 %v802_v43 }
 0x34c   : > { %787 = vmatpush.msra.mxu0 %v756_v36  ;;  %1037 = vmatpush.msra.mxu2 %v756_v36 }
 0x34d   : > { %828 = vmatpush.msra.mxu1 %v801_v44  ;;  %1053 = vmatpush.msra.mxu3 %v801_v44 }
 0x34e   : > { %788 = vmatpush.msra.mxu0 %v755_v45  ;;  %1038 = vmatpush.msra.mxu2 %v755_v45 }
 0x34f   : > { %829 = vmatpush.msra.mxu1 %v800_v42  ;;  %1054 = vmatpush.msra.mxu3 %v800_v42 }
 0x350   : > { %789 = vmatpush.msra.mxu0 %v754_v47  ;;  %1039 = vmatpush.msra.mxu2 %v754_v47 }
 0x351   : > { %790 = vmatmul.f32.vlgmr.msra.gmra.mxu0 %v752_v48  ;;  %830 = vmatpush.msra.mxu1 %v799_v51 }
 0x352   : > { %793 = vmatmul.f32.vlgmr.msra.gmra.mxu2 %v753_v52  ;;  %831 = vmatmul.f32.vlgmr.msra.gmra.mxu1 %v797_v53 }
 0x353   : > { %1055 = vmatpush.msra.mxu3 %v799_v51 }
 0x354   : > { %834 = vmatmul.f32.vlgmr.msra.gmra.mxu3 %v798_v54 }
 0x3ce   : > { %v791_v34 = vpop.f32.mrf.mxu0 }
 0x3cf   : > { %v792_v50 = vadd.f32 %v1158_v56, %v791_v34  ;;  %v832_v58 = vpop.f32.mrf.mxu1 }
 0x3d1   : > { %v838_v59 = vadd.f32 %v832_v58, %v792_v50 }
 0x3d3   : > { %v843_v61 = vsel %vm842_vm3, %v838_v59, -1e+30 }
 0x3d4   : > { %845 = vmax.xlane.f32.xlu0 %v843_v61 }
 0x3d5   : > { %v794_v60 = vpop.f32.mrf.mxu2 }
 0x3d6   : > { %v795_v62 = vadd.f32 %v1158_v56, %v794_v60 }
 0x3d7   : > { %v835_v63 = vpop.f32.mrf.mxu3 }
 0x3d8   : > { %v839_v1 = vadd.f32 %v835_v63, %v795_v62 }
 0x3da   : > { %v844_v3 = vsel %vm842_vm3, %v839_v1, -1e+30 }
 0x3dc   : > { %847 = vmax.xlane.f32.xlu0 %v844_v3 }
 0x447   : > { %v846_v4 = vpop.xlane.xlu0 %845 }
 0x448   : > { %v849_v5 = vsub.f32 %v843_v61, %v846_v4 }
 0x44a   : > { %v851_v6 = vmul.f32 1.442695, %v849_v5 }
 0x44c   : > { %1159 = vpow2.f32 %v851_v6 }
 0x44f   : > { %v848_v7 = vpop.xlane.xlu0 %847 }
 0x450   : > { %v850_v8 = vsub.f32 %v844_v3, %v848_v7 }
 0x452   : > { %v1160_v46 = vpop.eup %1159  ;;  %v853_v9 = vmul.f32 1.442695, %v850_v8 }
 0x453   : > { %855 = vadd.xlane.f32.xlu1 %v1160_v46 }
 0x454   : > { %1161 = vpow2.f32 %v853_v9 }
 0x45a   : > { %v1162_v10 = vpop.eup %1161 }
 0x45b   : > { %857 = vadd.xlane.f32.xlu1 %v1162_v10 }
 0x4c6   : > { %v856_v11 = vpop.xlane.xlu1 %855 }
 0x4c7   : > { %1163 = vlog2.f32 %v856_v11 }
 0x4cd   : > { %v1164_v49 = vpop.eup %1163 }
 0x4ce   : > { %v860_v12 = vmul.f32 0.6931472, %v1164_v49  ;;  %v858_v13 = vpop.xlane.xlu1 %857 }
 0x4cf   : > { %1165 = vlog2.f32 %v858_v13 }
 0x4d0   : > { %v863_v14 = vadd.f32 %v860_v12, %v846_v4 }
 0x4d2   : > { %v865_v15 = vsub.f32 %v843_v61, %v863_v14 }
 0x4d4   : > { %867 = vst [vmem:[#allocation13] sm:$0xff] %v865_v15 }
 0x4d5   : > { %v1166_v16 = vpop.eup %1165 }
 0x4d6   : > { %v862_v17 = vmul.f32 0.6931472, %v1166_v16 }
 0x4d8   : > { %v864_v18 = vadd.f32 %v862_v17, %v848_v7 }
 0x4da   : > { %v866_v19 = vsub.f32 %v844_v3, %v864_v18 }
 0x4dc   : > { %868 = vst [vmem:[#allocation13 + $0x8] sm:$0xff] %v866_v19 }
 0x4dd PF: > { %p1095_p4 = scmp.eq.s32.totalorder %s1446_s13, 1  ;;  %s1374_s3 = smov [#allocation13]  }
 0x4de   : > { %s874_s15 = sshll.u32 %s1374_s3, 4  ;;  %s876_s16 = sshll.u32 %s1691_s9, 4  ;;  %s875_s15 = int_to_ptr.vmem [resolvable:$true] %s874_s15  ;;  %s877_s16 = int_to_ptr.hbm [resolvable:$true] %s876_s16 }
 0x4df   : > { %s1375_s20 = smov 128   ;;  %s1376_s22 = smov 8  }
 0x4e0   : > { %1071 = dma.vmem_to_hbm [thread:$0]  (%p1095_p4), %s875_s15, 256, %s877_s16, [#allocation7], %s1375_s20, %s1375_s20, %s1376_s22  }
 0x4e1   : > { %1348 = dma.done.wait (%p1095_p4), [#allocation7], 256  }
 0x4e2   : > { %1350 = vsyncadd (%p1095_p4), [#allocation7], 4294967040 }
 0x4e3 PF: > { %p22_p5 = scmp.ge.s32.totalorder %s1491_s19, 4   ;;  %s1702_s30 = smov %s1357_s10 }
 0x4e4   : > { %s1703_s10 = smov %s1361_s11  ;;  %s1704_s11 = smov %s1505_s23 }
 0x4e5   : > { %s1705_s12 = smov %s1491_s19  ;;  %24 = sbr.rel (!%p22_p5) target bundleno = 9 (0x9), region = 114 }
 0x4ea   :  { %893 = vsyncpa [#allocation6], 1 }
 0x4eb   :  { %895 = vsyncpa [#allocation6 + $0x1], 1 }
 0x4ec   :  { %896 = vsyncpa [#allocation9], 1 }
 0x4ed   :  { %898 = vsyncpa [#allocation9 + $0x1], 1 }
 0x4ee   :  { %899 = vsyncpa [#allocation12], 1 }
 0x4ef   :  { %900 = vsyncpa [#allocation7], 1 }
 0x4f0   :  { %902 = vsyncpa [#allocation7 + $0x1], 1 }

</bundles_post_ra>
